<compile_context>
chip_gen: v5e
topology: v5e:2x2
jax: 0.10.0
libtpu: 0.0.40
codegen_flags: <defaults>
</compile_context>

<pallas_src>
import functools

import jax
import jax.numpy as jnp
from jax.experimental import pallas as pl
from jax.experimental.pallas import tpu as pltpu


def _round_up(x, m):
    return (x + m - 1) // m * m


def _pick_time_chunk(T, max_chunk):
    """Chunk size that balances chunks and minimizes padding (no tt=1 cliff)."""
    n_chunks = -(-T // max_chunk)          # ceil(T / max_chunk)
    tt = -(-T // n_chunks)                 # ceil(T / n_chunks)
    pad = tt * n_chunks - T                # 0 <= pad < n_chunks
    return tt, n_chunks, pad


def _rnn_chunk_kernel(px_ref, h0_ref, whh_t_ref, wfc_t_ref,
                      logits_ref, h_last_ref, h_scratch, *, tt, t_valid, pad):
    """Processes `tt` timesteps per grid invocation.

    px_ref:     (tt, Bp, Hp) f32   pre_x chunk = embed_proj[token] (time-major)
    h0_ref:     (Bp, Hp)     f32   initial hidden state (read on chunk 0 only)
    whh_t_ref:  (Hp, Hp)     bf16  W_hh^T (zero-padded)
    wfc_t_ref:  (Hp, Op)     bf16  W_fc^T (zero-padded)
    logits_ref: (tt, Bp, Op) f32   per-step logits (bias added outside)
    h_last_ref: (Bp, Hp)     f32   final hidden state
    h_scratch:  (Bp, Hp)     f32   hidden state carried across chunks
    """
    c = pl.program_id(0)

    @pl.when(c == 0)
    def _():
        h_scratch[...] = h0_ref[...]

    h = h_scratch[...]               # fp32 carry
    w_hh = whh_t_ref[...]            # bf16
    w_fc = wfc_t_ref[...]            # bf16

    # Statically unrolled recurrence over the time chunk.
    for t in range(tt):
        h_new = jnp.tanh(
            px_ref[t]
            + jnp.dot(h.astype(jnp.bfloat16), w_hh,
                      preferred_element_type=jnp.float32))
        if pad > 0 and t >= tt - pad:
            # Possibly a padded (beyond-T) step on the last chunk: freeze h.
            valid = (c * tt + t) < t_valid
            h = jnp.where(valid, h_new, h)
        else:
            h = h_new
        # Fused output projection; off the recurrence critical path, so the
        # MXU slack absorbs it.  Padded steps write garbage that is sliced off.
        logits_ref[t] = jnp.dot(h.astype(jnp.bfloat16), w_fc,
                                preferred_element_type=jnp.float32)

    h_scratch[...] = h
    # Constant-index-map output: written back once after the last chunk,
    # which (thanks to the freeze guard) is exactly h_{T-1}.
    h_last_ref[...] = h


def char_rnn_forward(tokens, hidden, params, *, max_time_chunk=32):
    """tokens: (B, T) int32, hidden: (num_layers=1, B, H).
    Returns (output (B*T, O), hidden (1, B, H)) matching the PyTorch module."""
    embed = params["embed"]          # (V, H)
    w_ih = params["w_ih"]            # (H, H)
    w_hh = params["w_hh"]            # (H, H)
    b_ih = params["b_ih"]            # (H,)
    b_hh = params["b_hh"]            # (H,)
    w_fc = params["w_fc"]            # (O, H)
    b_fc = params["b_fc"]            # (O,)

    B, T = tokens.shape
    H = embed.shape[1]
    O = w_fc.shape[0]

    # ---- XLA glue: fold embedding + input projection + biases into one table,
    #      then gather in time-major order (no big GEMM / transpose). ----
    embed_proj = (embed @ w_ih.T + (b_ih + b_hh)).astype(jnp.float32)   # (V, H)
    pre_x = jnp.take(embed_proj, tokens.T, axis=0)                      # (T, B, H)

    # ---- Pad to hardware tiles: B -> 8-sublane, H/O -> 128-lane, T -> chunk. ----
    Bp = _round_up(B, 8)
    Hp = _round_up(H, 128)
    Op = _round_up(O, 128)

    tt, n_chunks, pad = _pick_time_chunk(T, max_time_chunk)
    Tp = tt * n_chunks

    px_p = jnp.zeros((Tp, Bp, Hp), jnp.float32).at[:T, :B, :H].set(pre_x)
    h0_p = jnp.zeros((Bp, Hp), jnp.float32).at[:B, :H].set(
        hidden[0].astype(jnp.float32))
    whh_t_p = jnp.zeros((Hp, Hp), jnp.bfloat16).at[:H, :H].set(
        w_hh.T.astype(jnp.bfloat16))
    wfc_t_p = jnp.zeros((Hp, Op), jnp.bfloat16).at[:H, :O].set(
        w_fc.T.astype(jnp.bfloat16))

    # ---- Explicit VMEM budget (double-buffered px/logits, single-buffered
    #      weights/h0, scratch).  Clamped to stay inside v7x's 64 MiB. ----
    vmem_need = (2 * tt * Bp * Hp * 4        # px (double buffered)
                 + 2 * tt * Bp * Op * 4      # logits (double buffered)
                 + Hp * Hp * 2 + Hp * Op * 2 # bf16 weights (single buffered)
                 + 4 * Bp * Hp * 4)          # h0 + h_last + scratch (+slack)
    vmem_limit = int(min(max(2 * vmem_need, 32 << 20), 48 << 20))

    grid_spec = pltpu.PrefetchScalarGridSpec(
        num_scalar_prefetch=0,
        grid=(n_chunks,),
        in_specs=[
            pl.BlockSpec((tt, Bp, Hp), lambda c: (c, 0, 0)),      # pre_x chunk
            pl.BlockSpec((Bp, Hp), lambda c: (0, 0),
                         pipeline_mode=pl.Buffered(1)),           # h0
            pl.BlockSpec((Hp, Hp), lambda c: (0, 0),
                         pipeline_mode=pl.Buffered(1)),           # W_hh^T
            pl.BlockSpec((Hp, Op), lambda c: (0, 0),
                         pipeline_mode=pl.Buffered(1)),           # W_fc^T
        ],
        out_specs=[
            pl.BlockSpec((tt, Bp, Op), lambda c: (c, 0, 0)),      # logits chunk
            pl.BlockSpec((Bp, Hp), lambda c: (0, 0)),             # final hidden
        ],
        scratch_shapes=[pltpu.VMEM((Bp, Hp), jnp.float32)],       # carried h
    )

    logits_p, h_last = pl.pallas_call(
        functools.partial(_rnn_chunk_kernel, tt=tt, t_valid=T, pad=pad),
        out_shape=(
            jax.ShapeDtypeStruct((Tp, Bp, Op), jnp.float32),
            jax.ShapeDtypeStruct((Bp, Hp), jnp.float32),
        ),
        grid_spec=grid_spec,
        compiler_params=pltpu.CompilerParams(
            dimension_semantics=("arbitrary",),                   # serial in time
            vmem_limit_bytes=vmem_limit),
    )(px_p, h0_p, whh_t_p, wfc_t_p)

    # ---- XLA glue: only the small (T, B, O) logits are transposed back. ----
    logits = logits_p[:T, :B, :O]                                 # (T, B, O)
    output = logits.transpose(1, 0, 2).reshape(B * T, O) + b_fc   # (B*T, O)

    hidden_out = h_last[:B, :H][None, :, :]                       # (1, B, H)
    return output, hidden_out


def _char_rnn_reference(tokens, hidden, params):
    """Pure-JAX reference (same math as PyTorch nn.RNN(tanh) + Linear)."""
    embed, w_ih, w_hh = params["embed"], params["w_ih"], params["w_hh"]
    b_ih, b_hh, w_fc, b_fc = (params["b_ih"], params["b_hh"],
                              params["w_fc"], params["b_fc"])
    B, T = tokens.shape
    x = jnp.take(embed, tokens, axis=0)              # (B, T, H)

    def step(h, x_t):
        h = jnp.tanh(x_t @ w_ih.T + b_ih + h @ w_hh.T + b_hh)
        return h, h

    h_last, hs = jax.lax.scan(step, hidden[0], jnp.transpose(x, (1, 0, 2)))
    hs = jnp.transpose(hs, (1, 0, 2)).reshape(B * T, -1)
    out = hs @ w_fc.T + b_fc
    return out, h_last[None]


def init_params(key, vocab_size, hidden_size, output_size):
    ks = jax.random.split(key, 7)
    s = 0.1
    return {
        "embed": jax.random.normal(ks[0], (vocab_size, hidden_size), jnp.float32) * s,
        "w_ih": jax.random.normal(ks[1], (hidden_size, hidden_size), jnp.float32) * s,
        "w_hh": jax.random.normal(ks[2], (hidden_size, hidden_size), jnp.float32) * s,
        "b_ih": jax.random.normal(ks[3], (hidden_size,), jnp.float32) * s,
        "b_hh": jax.random.normal(ks[4], (hidden_size,), jnp.float32) * s,
        "w_fc": jax.random.normal(ks[5], (output_size, hidden_size), jnp.float32) * s,
        "b_fc": jax.random.normal(ks[6], (output_size,), jnp.float32) * s,
    }


if __name__ == "__main__":
    vocab_size, hidden_size, output_size = 16, 32, 16
    batch, seq = 2, 8

    key = jax.random.PRNGKey(0)
    k_tok, k_par = jax.random.split(key)

    tokens = jax.random.randint(k_tok, (batch, seq), 0, vocab_size, dtype=jnp.int32)
    hidden0 = jnp.zeros((1, batch, hidden_size), jnp.float32)  # init_hidden
    params = init_params(k_par, vocab_size, hidden_size, output_size)

    output, hidden_n = char_rnn_forward(tokens, hidden0, params)
    jax.block_until_ready((output, hidden_n))

    assert output.shape == (batch * seq, output_size)
    assert hidden_n.shape == (1, batch, hidden_size)

    # Numerical sanity check vs. a pure-JAX reference (loose tolerance: the
    # kernel uses bf16 MXU operands with fp32 accumulation/carry).
    ref_out, ref_hidden = _char_rnn_reference(tokens, hidden0, params)
    assert jnp.allclose(output, ref_out, atol=2e-2, rtol=2e-2)
    assert jnp.allclose(hidden_n, ref_hidden, atol=2e-2, rtol=2e-2)

    print("KERNEL_OK")
</pallas_src>

<mosaic_0001>
module attributes {stable_mosaic.version = 11 : i64} {
  func.func @_rnn_chunk_kernel(%arg0: i32, %arg1: memref<8x8x128xf32, #tpu.memory_space<vmem>>, %arg2: memref<8x128xf32, #tpu.memory_space<vmem>>, %arg3: memref<128x128xbf16, #tpu.memory_space<vmem>>, %arg4: memref<128x128xbf16, #tpu.memory_space<vmem>>, %arg5: memref<8x8x128xf32, #tpu.memory_space<vmem>>, %arg6: memref<8x128xf32, #tpu.memory_space<vmem>>, %arg7: memref<8x128xf32, #tpu.memory_space<vmem>>) attributes {dimension_semantics = [#tpu.dimension_semantics<arbitrary>], iteration_bounds = array<i64: 1>, scalar_prefetch = 0 : i64, scratch_operands = 1 : i64, tpu.core_type = #tpu.core_type<tc>, window_params = [{transform_indices = @transform_0, window_bounds = array<i64: 8, 8, 128>}, {pipeline_mode = #tpu.pipeline_mode<synchronous>, transform_indices = @transform_1, window_bounds = array<i64: 8, 128>}, {pipeline_mode = #tpu.pipeline_mode<synchronous>, transform_indices = @transform_2, window_bounds = array<i64: 128, 128>}, {pipeline_mode = #tpu.pipeline_mode<synchronous>, transform_indices = @transform_3, window_bounds = array<i64: 128, 128>}, {transform_indices = @transform_4, window_bounds = array<i64: 8, 8, 128>}, {pipeline_mode = #tpu.pipeline_mode<synchronous>, transform_indices = @transform_5, window_bounds = array<i64: 8, 128>}]} {
    %c0_i32 = arith.constant 0 : i32
    %0 = arith.cmpi eq, %arg0, %c0_i32 : i32
    %1 = arith.extui %0 : i1 to i32
    %c0_i32_0 = arith.constant 0 : i32
    %2 = arith.cmpi ne, %1, %c0_i32_0 : i32
    scf.if %2 {
      %c0_66 = arith.constant 0 : index
      %c0_67 = arith.constant 0 : index
      %96 = vector.load %arg2[%c0_66, %c0_67] : memref<8x128xf32, #tpu.memory_space<vmem>>, vector<8x128xf32>
      %c0_68 = arith.constant 0 : index
      %c0_69 = arith.constant 0 : index
      %97 = vector.load %arg7[%c0_68, %c0_69] : memref<8x128xf32, #tpu.memory_space<vmem>>, vector<8x128xf32>
      tpu.vector_store %arg7[%c0_68, %c0_69], %96 {strides = array<i32>} : memref<8x128xf32, #tpu.memory_space<vmem>>, vector<8x128xf32>,
    } else {
    }
    %c0 = arith.constant 0 : index
    %c0_1 = arith.constant 0 : index
    %3 = vector.load %arg7[%c0, %c0_1] : memref<8x128xf32, #tpu.memory_space<vmem>>, vector<8x128xf32>
    %c0_2 = arith.constant 0 : index
    %c0_3 = arith.constant 0 : index
    %4 = vector.load %arg3[%c0_2, %c0_3] : memref<128x128xbf16, #tpu.memory_space<vmem>>, vector<128x128xbf16>
    %c0_4 = arith.constant 0 : index
    %c0_5 = arith.constant 0 : index
    %5 = vector.load %arg4[%c0_4, %c0_5] : memref<128x128xbf16, #tpu.memory_space<vmem>>, vector<128x128xbf16>
    %c0_6 = arith.constant 0 : index
    %c0_7 = arith.constant 0 : index
    %c0_8 = arith.constant 0 : index
    %6 = vector.load %arg1[%c0_6, %c0_7, %c0_8] : memref<8x8x128xf32, #tpu.memory_space<vmem>>, vector<1x8x128xf32>
    %7 = vector.shape_cast %6 : vector<1x8x128xf32> to vector<8x128xf32>
    %8 = arith.truncf %3 : vector<8x128xf32> to vector<8x128xbf16>
    %cst = arith.constant dense<0.000000e+00> : vector<8x128xf32>
    %9 = tpu.matmul %8, %4, %cst {dimension_numbers = #tpu.dot_dimension_numbers<[1], [0], [0], [1], [0, 0, 1, 1], [], []>} : vector<8x128xbf16>, vector<128x128xbf16>, vector<8x128xf32> -> vector<8x128xf32>
    %10 = arith.addf %7, %9 : vector<8x128xf32>
    %11 = math.tanh %10 : vector<8x128xf32>
    %12 = arith.truncf %11 : vector<8x128xf32> to vector<8x128xbf16>
    %cst_9 = arith.constant dense<0.000000e+00> : vector<8x128xf32>
    %13 = tpu.matmul %12, %5, %cst_9 {dimension_numbers = #tpu.dot_dimension_numbers<[1], [0], [0], [1], [0, 0, 1, 1], [], []>} : vector<8x128xbf16>, vector<128x128xbf16>, vector<8x128xf32> -> vector<8x128xf32>
    %c0_10 = arith.constant 0 : index
    %c0_11 = arith.constant 0 : index
    %c0_12 = arith.constant 0 : index
    %14 = vector.load %arg5[%c0_10, %c0_11, %c0_12] : memref<8x8x128xf32, #tpu.memory_space<vmem>>, vector<1x8x128xf32>
    %15 = vector.shape_cast %14 : vector<1x8x128xf32> to vector<8x128xf32>
    %16 = vector.shape_cast %13 : vector<8x128xf32> to vector<1x8x128xf32>
    tpu.vector_store %arg5[%c0_10, %c0_11, %c0_12], %16 {strides = array<i32>} : memref<8x8x128xf32, #tpu.memory_space<vmem>>, vector<1x8x128xf32>,
    %c1 = arith.constant 1 : index
    %c0_13 = arith.constant 0 : index
    %c0_14 = arith.constant 0 : index
    %17 = vector.load %arg1[%c1, %c0_13, %c0_14] : memref<8x8x128xf32, #tpu.memory_space<vmem>>, vector<1x8x128xf32>
    %18 = vector.shape_cast %17 : vector<1x8x128xf32> to vector<8x128xf32>
    %19 = arith.truncf %11 : vector<8x128xf32> to vector<8x128xbf16>
    %cst_15 = arith.constant dense<0.000000e+00> : vector<8x128xf32>
    %20 = tpu.matmul %19, %4, %cst_15 {dimension_numbers = #tpu.dot_dimension_numbers<[1], [0], [0], [1], [0, 0, 1, 1], [], []>} : vector<8x128xbf16>, vector<128x128xbf16>, vector<8x128xf32> -> vector<8x128xf32>
    %21 = arith.addf %18, %20 : vector<8x128xf32>
    %22 = math.tanh %21 : vector<8x128xf32>
    %23 = arith.truncf %22 : vector<8x128xf32> to vector<8x128xbf16>
    %cst_16 = arith.constant dense<0.000000e+00> : vector<8x128xf32>
    %24 = tpu.matmul %23, %5, %cst_16 {dimension_numbers = #tpu.dot_dimension_numbers<[1], [0], [0], [1], [0, 0, 1, 1], [], []>} : vector<8x128xbf16>, vector<128x128xbf16>, vector<8x128xf32> -> vector<8x128xf32>
    %c1_17 = arith.constant 1 : index
    %c0_18 = arith.constant 0 : index
    %c0_19 = arith.constant 0 : index
    %25 = vector.load %arg5[%c1_17, %c0_18, %c0_19] : memref<8x8x128xf32, #tpu.memory_space<vmem>>, vector<1x8x128xf32>
    %26 = vector.shape_cast %25 : vector<1x8x128xf32> to vector<8x128xf32>
    %27 = vector.shape_cast %24 : vector<8x128xf32> to vector<1x8x128xf32>
    tpu.vector_store %arg5[%c1_17, %c0_18, %c0_19], %27 {strides = array<i32>} : memref<8x8x128xf32, #tpu.memory_space<vmem>>, vector<1x8x128xf32>,
    %c2 = arith.constant 2 : index
    %c0_20 = arith.constant 0 : index
    %c0_21 = arith.constant 0 : index
    %28 = vector.load %arg1[%c2, %c0_20, %c0_21] : memref<8x8x128xf32, #tpu.memory_space<vmem>>, vector<1x8x128xf32>
    %29 = vector.shape_cast %28 : vector<1x8x128xf32> to vector<8x128xf32>
    %30 = arith.truncf %22 : vector<8x128xf32> to vector<8x128xbf16>
    %cst_22 = arith.constant dense<0.000000e+00> : vector<8x128xf32>
    %31 = tpu.matmul %30, %4, %cst_22 {dimension_numbers = #tpu.dot_dimension_numbers<[1], [0], [0], [1], [0, 0, 1, 1], [], []>} : vector<8x128xbf16>, vector<128x128xbf16>, vector<8x128xf32> -> vector<8x128xf32>
    %32 = arith.addf %29, %31 : vector<8x128xf32>
    %33 = math.tanh %32 : vector<8x128xf32>
    %34 = arith.truncf %33 : vector<8x128xf32> to vector<8x128xbf16>
    %cst_23 = arith.constant dense<0.000000e+00> : vector<8x128xf32>
    %35 = tpu.matmul %34, %5, %cst_23 {dimension_numbers = #tpu.dot_dimension_numbers<[1], [0], [0], [1], [0, 0, 1, 1], [], []>} : vector<8x128xbf16>, vector<128x128xbf16>, vector<8x128xf32> -> vector<8x128xf32>
    %c2_24 = arith.constant 2 : index
    %c0_25 = arith.constant 0 : index
    %c0_26 = arith.constant 0 : index
    %36 = vector.load %arg5[%c2_24, %c0_25, %c0_26] : memref<8x8x128xf32, #tpu.memory_space<vmem>>, vector<1x8x128xf32>
    %37 = vector.shape_cast %36 : vector<1x8x128xf32> to vector<8x128xf32>
    %38 = vector.shape_cast %35 : vector<8x128xf32> to vector<1x8x128xf32>
    tpu.vector_store %arg5[%c2_24, %c0_25, %c0_26], %38 {strides = array<i32>} : memref<8x8x128xf32, #tpu.memory_space<vmem>>, vector<1x8x128xf32>,
    %c3 = arith.constant 3 : index
    %c0_27 = arith.constant 0 : index
    %c0_28 = arith.constant 0 : index
    %39 = vector.load %arg1[%c3, %c0_27, %c0_28] : memref<8x8x128xf32, #tpu.memory_space<vmem>>, vector<1x8x128xf32>
    %40 = vector.shape_cast %39 : vector<1x8x128xf32> to vector<8x128xf32>
    %41 = arith.truncf %33 : vector<8x128xf32> to vector<8x128xbf16>
    %cst_29 = arith.constant dense<0.000000e+00> : vector<8x128xf32>
    %42 = tpu.matmul %41, %4, %cst_29 {dimension_numbers = #tpu.dot_dimension_numbers<[1], [0], [0], [1], [0, 0, 1, 1], [], []>} : vector<8x128xbf16>, vector<128x128xbf16>, vector<8x128xf32> -> vector<8x128xf32>
    %43 = arith.addf %40, %42 : vector<8x128xf32>
    %44 = math.tanh %43 : vector<8x128xf32>
    %45 = arith.truncf %44 : vector<8x128xf32> to vector<8x128xbf16>
    %cst_30 = arith.constant dense<0.000000e+00> : vector<8x128xf32>
    %46 = tpu.matmul %45, %5, %cst_30 {dimension_numbers = #tpu.dot_dimension_numbers<[1], [0], [0], [1], [0, 0, 1, 1], [], []>} : vector<8x128xbf16>, vector<128x128xbf16>, vector<8x128xf32> -> vector<8x128xf32>
    %c3_31 = arith.constant 3 : index
    %c0_32 = arith.constant 0 : index
    %c0_33 = arith.constant 0 : index
    %47 = vector.load %arg5[%c3_31, %c0_32, %c0_33] : memref<8x8x128xf32, #tpu.memory_space<vmem>>, vector<1x8x128xf32>
    %48 = vector.shape_cast %47 : vector<1x8x128xf32> to vector<8x128xf32>
    %49 = vector.shape_cast %46 : vector<8x128xf32> to vector<1x8x128xf32>
    tpu.vector_store %arg5[%c3_31, %c0_32, %c0_33], %49 {strides = array<i32>} : memref<8x8x128xf32, #tpu.memory_space<vmem>>, vector<1x8x128xf32>,
    %c4 = arith.constant 4 : index
    %c0_34 = arith.constant 0 : index
    %c0_35 = arith.constant 0 : index
    %50 = vector.load %arg1[%c4, %c0_34, %c0_35] : memref<8x8x128xf32, #tpu.memory_space<vmem>>, vector<1x8x128xf32>
    %51 = vector.shape_cast %50 : vector<1x8x128xf32> to vector<8x128xf32>
    %52 = arith.truncf %44 : vector<8x128xf32> to vector<8x128xbf16>
    %cst_36 = arith.constant dense<0.000000e+00> : vector<8x128xf32>
    %53 = tpu.matmul %52, %4, %cst_36 {dimension_numbers = #tpu.dot_dimension_numbers<[1], [0], [0], [1], [0, 0, 1, 1], [], []>} : vector<8x128xbf16>, vector<128x128xbf16>, vector<8x128xf32> -> vector<8x128xf32>
    %54 = arith.addf %51, %53 : vector<8x128xf32>
    %55 = math.tanh %54 : vector<8x128xf32>
    %56 = arith.truncf %55 : vector<8x128xf32> to vector<8x128xbf16>
    %cst_37 = arith.constant dense<0.000000e+00> : vector<8x128xf32>
    %57 = tpu.matmul %56, %5, %cst_37 {dimension_numbers = #tpu.dot_dimension_numbers<[1], [0], [0], [1], [0, 0, 1, 1], [], []>} : vector<8x128xbf16>, vector<128x128xbf16>, vector<8x128xf32> -> vector<8x128xf32>
    %c4_38 = arith.constant 4 : index
    %c0_39 = arith.constant 0 : index
    %c0_40 = arith.constant 0 : index
    %58 = vector.load %arg5[%c4_38, %c0_39, %c0_40] : memref<8x8x128xf32, #tpu.memory_space<vmem>>, vector<1x8x128xf32>
    %59 = vector.shape_cast %58 : vector<1x8x128xf32> to vector<8x128xf32>
    %60 = vector.shape_cast %57 : vector<8x128xf32> to vector<1x8x128xf32>
    tpu.vector_store %arg5[%c4_38, %c0_39, %c0_40], %60 {strides = array<i32>} : memref<8x8x128xf32, #tpu.memory_space<vmem>>, vector<1x8x128xf32>,
    %c5 = arith.constant 5 : index
    %c0_41 = arith.constant 0 : index
    %c0_42 = arith.constant 0 : index
    %61 = vector.load %arg1[%c5, %c0_41, %c0_42] : memref<8x8x128xf32, #tpu.memory_space<vmem>>, vector<1x8x128xf32>
    %62 = vector.shape_cast %61 : vector<1x8x128xf32> to vector<8x128xf32>
    %63 = arith.truncf %55 : vector<8x128xf32> to vector<8x128xbf16>
    %cst_43 = arith.constant dense<0.000000e+00> : vector<8x128xf32>
    %64 = tpu.matmul %63, %4, %cst_43 {dimension_numbers = #tpu.dot_dimension_numbers<[1], [0], [0], [1], [0, 0, 1, 1], [], []>} : vector<8x128xbf16>, vector<128x128xbf16>, vector<8x128xf32> -> vector<8x128xf32>
    %65 = arith.addf %62, %64 : vector<8x128xf32>
    %66 = math.tanh %65 : vector<8x128xf32>
    %67 = arith.truncf %66 : vector<8x128xf32> to vector<8x128xbf16>
    %cst_44 = arith.constant dense<0.000000e+00> : vector<8x128xf32>
    %68 = tpu.matmul %67, %5, %cst_44 {dimension_numbers = #tpu.dot_dimension_numbers<[1], [0], [0], [1], [0, 0, 1, 1], [], []>} : vector<8x128xbf16>, vector<128x128xbf16>, vector<8x128xf32> -> vector<8x128xf32>
    %c5_45 = arith.constant 5 : index
    %c0_46 = arith.constant 0 : index
    %c0_47 = arith.constant 0 : index
    %69 = vector.load %arg5[%c5_45, %c0_46, %c0_47] : memref<8x8x128xf32, #tpu.memory_space<vmem>>, vector<1x8x128xf32>
    %70 = vector.shape_cast %69 : vector<1x8x128xf32> to vector<8x128xf32>
    %71 = vector.shape_cast %68 : vector<8x128xf32> to vector<1x8x128xf32>
    tpu.vector_store %arg5[%c5_45, %c0_46, %c0_47], %71 {strides = array<i32>} : memref<8x8x128xf32, #tpu.memory_space<vmem>>, vector<1x8x128xf32>,
    %c6 = arith.constant 6 : index
    %c0_48 = arith.constant 0 : index
    %c0_49 = arith.constant 0 : index
    %72 = vector.load %arg1[%c6, %c0_48, %c0_49] : memref<8x8x128xf32, #tpu.memory_space<vmem>>, vector<1x8x128xf32>
    %73 = vector.shape_cast %72 : vector<1x8x128xf32> to vector<8x128xf32>
    %74 = arith.truncf %66 : vector<8x128xf32> to vector<8x128xbf16>
    %cst_50 = arith.constant dense<0.000000e+00> : vector<8x128xf32>
    %75 = tpu.matmul %74, %4, %cst_50 {dimension_numbers = #tpu.dot_dimension_numbers<[1], [0], [0], [1], [0, 0, 1, 1], [], []>} : vector<8x128xbf16>, vector<128x128xbf16>, vector<8x128xf32> -> vector<8x128xf32>
    %76 = arith.addf %73, %75 : vector<8x128xf32>
    %77 = math.tanh %76 : vector<8x128xf32>
    %78 = arith.truncf %77 : vector<8x128xf32> to vector<8x128xbf16>
    %cst_51 = arith.constant dense<0.000000e+00> : vector<8x128xf32>
    %79 = tpu.matmul %78, %5, %cst_51 {dimension_numbers = #tpu.dot_dimension_numbers<[1], [0], [0], [1], [0, 0, 1, 1], [], []>} : vector<8x128xbf16>, vector<128x128xbf16>, vector<8x128xf32> -> vector<8x128xf32>
    %c6_52 = arith.constant 6 : index
    %c0_53 = arith.constant 0 : index
    %c0_54 = arith.constant 0 : index
    %80 = vector.load %arg5[%c6_52, %c0_53, %c0_54] : memref<8x8x128xf32, #tpu.memory_space<vmem>>, vector<1x8x128xf32>
    %81 = vector.shape_cast %80 : vector<1x8x128xf32> to vector<8x128xf32>
    %82 = vector.shape_cast %79 : vector<8x128xf32> to vector<1x8x128xf32>
    tpu.vector_store %arg5[%c6_52, %c0_53, %c0_54], %82 {strides = array<i32>} : memref<8x8x128xf32, #tpu.memory_space<vmem>>, vector<1x8x128xf32>,
    %c7 = arith.constant 7 : index
    %c0_55 = arith.constant 0 : index
    %c0_56 = arith.constant 0 : index
    %83 = vector.load %arg1[%c7, %c0_55, %c0_56] : memref<8x8x128xf32, #tpu.memory_space<vmem>>, vector<1x8x128xf32>
    %84 = vector.shape_cast %83 : vector<1x8x128xf32> to vector<8x128xf32>
    %85 = arith.truncf %77 : vector<8x128xf32> to vector<8x128xbf16>
    %cst_57 = arith.constant dense<0.000000e+00> : vector<8x128xf32>
    %86 = tpu.matmul %85, %4, %cst_57 {dimension_numbers = #tpu.dot_dimension_numbers<[1], [0], [0], [1], [0, 0, 1, 1], [], []>} : vector<8x128xbf16>, vector<128x128xbf16>, vector<8x128xf32> -> vector<8x128xf32>
    %87 = arith.addf %84, %86 : vector<8x128xf32>
    %88 = math.tanh %87 : vector<8x128xf32>
    %89 = arith.truncf %88 : vector<8x128xf32> to vector<8x128xbf16>
    %cst_58 = arith.constant dense<0.000000e+00> : vector<8x128xf32>
    %90 = tpu.matmul %89, %5, %cst_58 {dimension_numbers = #tpu.dot_dimension_numbers<[1], [0], [0], [1], [0, 0, 1, 1], [], []>} : vector<8x128xbf16>, vector<128x128xbf16>, vector<8x128xf32> -> vector<8x128xf32>
    %c7_59 = arith.constant 7 : index
    %c0_60 = arith.constant 0 : index
    %c0_61 = arith.constant 0 : index
    %91 = vector.load %arg5[%c7_59, %c0_60, %c0_61] : memref<8x8x128xf32, #tpu.memory_space<vmem>>, vector<1x8x128xf32>
    %92 = vector.shape_cast %91 : vector<1x8x128xf32> to vector<8x128xf32>
    %93 = vector.shape_cast %90 : vector<8x128xf32> to vector<1x8x128xf32>
    tpu.vector_store %arg5[%c7_59, %c0_60, %c0_61], %93 {strides = array<i32>} : memref<8x8x128xf32, #tpu.memory_space<vmem>>, vector<1x8x128xf32>,
    %c0_62 = arith.constant 0 : index
    %c0_63 = arith.constant 0 : index
    %94 = vector.load %arg7[%c0_62, %c0_63] : memref<8x128xf32, #tpu.memory_space<vmem>>, vector<8x128xf32>
    tpu.vector_store %arg7[%c0_62, %c0_63], %88 {strides = array<i32>} : memref<8x128xf32, #tpu.memory_space<vmem>>, vector<8x128xf32>,
    %c0_64 = arith.constant 0 : index
    %c0_65 = arith.constant 0 : index
    %95 = vector.load %arg6[%c0_64, %c0_65] : memref<8x128xf32, #tpu.memory_space<vmem>>, vector<8x128xf32>
    tpu.vector_store %arg6[%c0_64, %c0_65], %88 {strides = array<i32>} : memref<8x128xf32, #tpu.memory_space<vmem>>, vector<8x128xf32>,
    return
  }
  func.func @transform_0(%arg0: i32) -> (i32, i32, i32) {
    %c0_i32 = arith.constant 0 : i32
    %c0_i32_0 = arith.constant 0 : i32
    %c0_i32_1 = arith.constant 0 : i32
    return %arg0, %c0_i32, %c0_i32_0 : i32, i32, i32
  }
  func.func @transform_1(%arg0: i32) -> (i32, i32) {
    %c0_i32 = arith.constant 0 : i32
    %c0_i32_0 = arith.constant 0 : i32
    %c0_i32_1 = arith.constant 0 : i32
    return %c0_i32, %c0_i32_0 : i32, i32
  }
  func.func @transform_2(%arg0: i32) -> (i32, i32) {
    %c0_i32 = arith.constant 0 : i32
    %c0_i32_0 = arith.constant 0 : i32
    %c0_i32_1 = arith.constant 0 : i32
    return %c0_i32, %c0_i32_0 : i32, i32
  }
  func.func @transform_3(%arg0: i32) -> (i32, i32) {
    %c0_i32 = arith.constant 0 : i32
    %c0_i32_0 = arith.constant 0 : i32
    %c0_i32_1 = arith.constant 0 : i32
    return %c0_i32, %c0_i32_0 : i32, i32
  }
  func.func @transform_4(%arg0: i32) -> (i32, i32, i32) {
    %c0_i32 = arith.constant 0 : i32
    %c0_i32_0 = arith.constant 0 : i32
    %c0_i32_1 = arith.constant 0 : i32
    return %arg0, %c0_i32, %c0_i32_0 : i32, i32, i32
  }
  func.func @transform_5(%arg0: i32) -> (i32, i32) {
    %c0_i32 = arith.constant 0 : i32
    %c0_i32_0 = arith.constant 0 : i32
    %c0_i32_1 = arith.constant 0 : i32
    return %c0_i32, %c0_i32_0 : i32, i32
  }
}

</mosaic_0001>

<bundles_post_ra>
// kernel: tpu_custom_call.1
= control target key start
LH: loop header
LB: loop body
LE: loop exit
PB: predicated region body
PF: predicated region fallthrough
CT: control target
= control target key end

     0   :  { %11 = vsyncpa [#allocation4], 0  ;;  %s1003_s0 = inlined_call_operand.hbm [shape: f32[8,8,128], index: 0, kind: input, shape index: {}]   ;;  %s1004_s1 = inlined_call_operand.hbm [shape: f32[8,128], index: 1, kind: input, shape index: {}]   ;;  %s1005_s2 = inlined_call_operand.hbm [shape: bf16[128,128], index: 2, kind: input, shape index: {}]   ;;  %s1006_s3 = inlined_call_operand.hbm [shape: bf16[128,128], index: 3, kind: input, shape index: {}]   ;;  %s1007_s4 = inlined_call_operand.hbm [shape: f32[8,8,128], index: 4, kind: output, shape index: {0}]   ;;  %s1008_s5 = inlined_call_operand.hbm [shape: f32[8,128], index: 5, kind: output, shape index: {1}]  }
   0x1   :  { %12 = vsyncpa [#allocation7], 0 }
   0x2   :  { %13 = vsyncpa [#allocation10], 0 }
   0x3   :  { %14 = vsyncpa [#allocation5], 0  ;;  %s34_s20 = sshll.u32 %s1004_s1, 4  ;;  %s35_s20 = int_to_ptr.hbm [resolvable:$true] %s34_s20 }
   0x4   :  { %15 = vsyncpa [#allocation13], 0  ;;  %s779_s21 = smov [#allocation6]   ;;  %s20_s25 = sshll.u32 %s1003_s0, 4  ;;  %s21_s25 = int_to_ptr.hbm [resolvable:$true] %s20_s25 }
   0x5   :  { %s36_s22 = sshll.u32 %s779_s21, 4  ;;  %s780_s26 = smov [#allocation3]   ;;  %s37_s22 = int_to_ptr.vmem [resolvable:$true] %s36_s22 }
   0x6   :  { %39 = dma.hbm_to_vmem [thread:$0]  %s35_s20, 128, %s37_s22, [#allocation7]  }
   0x7   :  { %s22_s27 = sshll.u32 %s780_s26, 4  ;;  %s781_s28 = smov 128   ;;  %s23_s27 = int_to_ptr.vmem [resolvable:$true] %s22_s27 }
   0x8   :  { %s782_s29 = smov 8   ;;  %s44_s6 = sshll.u32 %s1005_s2, 4  ;;  %s45_s6 = int_to_ptr.hbm [resolvable:$true] %s44_s6 }
   0x9   :  { %28 = dma.hbm_to_vmem [thread:$0]  %s21_s25, 1024, %s23_s27, [#allocation4], %s781_s28, %s781_s28, %s782_s29  }
   0xa   :  { %s783_s7 = smov [#allocation8]   ;;  %s57_s10 = sshll.u32 %s1006_s3, 4  ;;  %s58_s10 = int_to_ptr.hbm [resolvable:$true] %s57_s10 }
   0xb   :  { %s46_s8 = sshll.u32 %s783_s7, 4  ;;  %s784_s11 = smov 64   ;;  %s47_s8 = int_to_ptr.vmem [resolvable:$true] %s46_s8 }
   0xc   :  { %s785_s12 = smov 4   ;;  %s786_s13 = smov [#allocation9]  }
   0xd   :  { %52 = dma.hbm_to_vmem [thread:$0]  %s45_s6, 1024, %s47_s8, [#allocation7], %s784_s11, %s784_s11, %s785_s12  }
   0xe   :  { %s59_s14 = sshll.u32 %s786_s13, 4  ;;  %s60_s14 = int_to_ptr.vmem [resolvable:$true] %s59_s14 }
   0xf   :  { %65 = dma.hbm_to_vmem [thread:$0]  %s58_s10, 1024, %s60_s14, [#allocation10], %s784_s11, %s784_s11, %s785_s12  }
  0x10   :  { %769 = dma.done.wait [#allocation4], 1024  }
  0x11   :  { %770 = vsyncadd [#allocation4], 4294966272 }
  0x12   :  { %771 = dma.done.wait [#allocation7], 1152  }
  0x13   :  { %772 = vsyncadd [#allocation7], 4294966144 }
  0x14   :  { %773 = dma.done.wait [#allocation10], 1024  }
  0x15   :  { %774 = vsyncadd [#allocation10], 4294966272  ;;  %v834_v0 = vld [vmem:[#allocation8 + $0x38] sm:$0xff]  ;;  %v837_v1 = vld [vmem:[#allocation8 + $0x30] sm:$0xff]  ;;  %s787_s2 = smov [#allocation12]   ;;  %s502_s17 = sshll.u32 %s1008_s5, 4  ;;  %s503_s17 = int_to_ptr.hbm [resolvable:$true] %s502_s17 }
  0x16   :  { %171 = vmatpush.bf16.msra.mxu0 %v834_v0  ;;  %251 = vmatpush.bf16.msra.mxu2 %v834_v0  ;;  %v840_v2 = vld [vmem:[#allocation9 + $0x38] sm:$0xff]  ;;  %v843_v3 = vld [vmem:[#allocation9 + $0x30] sm:$0xff]  ;;  %v847_v4 = vld [vmem:[#allocation8 + $0x28] sm:$0xff]  ;;  %s500_s3 = sshll.u32 %s787_s2, 4  ;;  %s788_s18 = smov [#allocation11]   ;;  %s501_s3 = int_to_ptr.vmem [resolvable:$true] %s500_s3 }
  0x17   :  { %235 = vmatpush.bf16.msra.mxu1 %v840_v2  ;;  %267 = vmatpush.bf16.msra.mxu3 %v840_v2  ;;  %v851_v5 = vld [vmem:[#allocation9 + $0x28] sm:$0xff]  ;;  %v855_v6 = vld [vmem:[#allocation8 + $0x20] sm:$0xff]  ;;  %v863_v8 = vld [vmem:[#allocation8 + $0x18] sm:$0xff]  ;;  %s486_s19 = sshll.u32 %s788_s18, 4  ;;  %s488_s22 = sshll.u32 %s1007_s4, 4  ;;  %s487_s19 = int_to_ptr.vmem [resolvable:$true] %s486_s19  ;;  %s489_s22 = int_to_ptr.hbm [resolvable:$true] %s488_s22 }
  0x18   :  { %v859_v7 = vld [vmem:[#allocation9 + $0x20] sm:$0xff]  ;;  %v867_v9 = vld [vmem:[#allocation9 + $0x18] sm:$0xff]  ;;  %v871_v10 = vld [vmem:[#allocation8 + $0x10] sm:$0xff] }
  0x19   :  { %v877_v11 = vld [vmem:[#allocation8 + $0x8] sm:$0xff]  ;;  %v881_v12 = vld [vmem:[#allocation8] sm:$0xff]  ;;  %v86_v13 = vld [vmem:[#allocation6] sm:$0xff] }
  0x1a   :  { %172 = vmatpush.bf16.msra.mxu0 %v837_v1  ;;  %252 = vmatpush.bf16.msra.mxu2 %v837_v1  ;;  %v122_v14 = vpack.c.bf16 %v86_v13, %v86_v13  ;;  %v910_v15 = vld [vmem:[#allocation9 + $0x10] sm:$0xff]  ;;  %v914_v16 = vld [vmem:[#allocation9 + $0x8] sm:$0xff]  ;;  %v918_v17 = vld [vmem:[#allocation9] sm:$0xff] }
  0x1b   :  { %236 = vmatpush.bf16.msra.mxu1 %v843_v3  ;;  %268 = vmatpush.bf16.msra.mxu3 %v843_v3  ;;  %v121_v18 = vld [vmem:[#allocation3] sm:$0xff]  ;;  %v250_v25 = vld [vmem:[#allocation3 + $0x8] sm:$0xff]  ;;  %v283_v32 = vld [vmem:[#allocation3 + $0x10] sm:$0xff] }
  0x1c   :  { %v316_v41 = vld [vmem:[#allocation3 + $0x18] sm:$0xff]  ;;  %v349_v48 = vld [vmem:[#allocation3 + $0x20] sm:$0xff]  ;;  %v382_v57 = vld [vmem:[#allocation3 + $0x28] sm:$0xff] }
  0x1e   :  { %173 = vmatpush.bf16.msra.mxu0 %v847_v4  ;;  %253 = vmatpush.bf16.msra.mxu2 %v847_v4 }
  0x1f   :  { %237 = vmatpush.bf16.msra.mxu1 %v851_v5  ;;  %269 = vmatpush.bf16.msra.mxu3 %v851_v5 }
  0x22   :  { %174 = vmatpush.bf16.msra.mxu0 %v855_v6  ;;  %254 = vmatpush.bf16.msra.mxu2 %v855_v6 }
  0x23   :  { %238 = vmatpush.bf16.msra.mxu1 %v859_v7  ;;  %270 = vmatpush.bf16.msra.mxu3 %v859_v7 }
  0x26   :  { %175 = vmatpush.bf16.msra.mxu0 %v863_v8  ;;  %255 = vmatpush.bf16.msra.mxu2 %v863_v8 }
  0x27   :  { %239 = vmatpush.bf16.msra.mxu1 %v867_v9  ;;  %271 = vmatpush.bf16.msra.mxu3 %v867_v9 }
  0x2a   :  { %176 = vmatpush.bf16.msra.mxu0 %v871_v10  ;;  %256 = vmatpush.bf16.msra.mxu2 %v871_v10 }
  0x2b   :  { %240 = vmatpush.bf16.msra.mxu1 %v910_v15  ;;  %272 = vmatpush.bf16.msra.mxu3 %v910_v15 }
  0x2e   :  { %177 = vmatpush.bf16.msra.mxu0 %v877_v11  ;;  %257 = vmatpush.bf16.msra.mxu2 %v877_v11 }
  0x2f   :  { %241 = vmatpush.bf16.msra.mxu1 %v914_v16  ;;  %273 = vmatpush.bf16.msra.mxu3 %v914_v16 }
  0x32   :  { %178 = vmatpush.bf16.msra.mxu0 %v881_v12  ;;  %258 = vmatpush.bf16.msra.mxu2 %v881_v12 }
  0x33   :  { %242 = vmatpush.bf16.msra.mxu1 %v918_v17  ;;  %274 = vmatpush.bf16.msra.mxu3 %v918_v17 }
  0x35   :  { %179 = vmatmul.bf16.vlgmr.msra.gmra.mxu0 %v122_v14 }
  0x36   :  { %284 = vmatpush.bf16.msrb.mxu0 %v834_v0  ;;  %317 = vmatpush.bf16.msrb.mxu2 %v834_v0 }
  0x37   :  { %300 = vmatpush.bf16.msrb.mxu1 %v840_v2  ;;  %333 = vmatpush.bf16.msrb.mxu3 %v840_v2 }
  0x3a   :  { %285 = vmatpush.bf16.msrb.mxu0 %v837_v1  ;;  %318 = vmatpush.bf16.msrb.mxu2 %v837_v1 }
  0x3b   :  { %301 = vmatpush.bf16.msrb.mxu1 %v843_v3  ;;  %334 = vmatpush.bf16.msrb.mxu3 %v843_v3 }
  0x3e   :  { %286 = vmatpush.bf16.msrb.mxu0 %v847_v4  ;;  %319 = vmatpush.bf16.msrb.mxu2 %v847_v4 }
  0x3f   :  { %302 = vmatpush.bf16.msrb.mxu1 %v851_v5  ;;  %335 = vmatpush.bf16.msrb.mxu3 %v851_v5 }
  0x42   :  { %287 = vmatpush.bf16.msrb.mxu0 %v855_v6  ;;  %320 = vmatpush.bf16.msrb.mxu2 %v855_v6 }
  0x43   :  { %303 = vmatpush.bf16.msrb.mxu1 %v859_v7  ;;  %336 = vmatpush.bf16.msrb.mxu3 %v859_v7 }
  0x46   :  { %288 = vmatpush.bf16.msrb.mxu0 %v863_v8  ;;  %321 = vmatpush.bf16.msrb.mxu2 %v863_v8 }
  0x47   :  { %304 = vmatpush.bf16.msrb.mxu1 %v867_v9  ;;  %337 = vmatpush.bf16.msrb.mxu3 %v867_v9 }
  0x4a   :  { %289 = vmatpush.bf16.msrb.mxu0 %v871_v10  ;;  %322 = vmatpush.bf16.msrb.mxu2 %v871_v10 }
  0x4b   :  { %305 = vmatpush.bf16.msrb.mxu1 %v910_v15  ;;  %338 = vmatpush.bf16.msrb.mxu3 %v910_v15 }
  0x4e   :  { %290 = vmatpush.bf16.msrb.mxu0 %v877_v11  ;;  %323 = vmatpush.bf16.msrb.mxu2 %v877_v11 }
  0x4f   :  { %306 = vmatpush.bf16.msrb.mxu1 %v914_v16  ;;  %339 = vmatpush.bf16.msrb.mxu3 %v914_v16 }
  0x52   :  { %291 = vmatpush.bf16.msrb.mxu0 %v881_v12  ;;  %324 = vmatpush.bf16.msrb.mxu2 %v881_v12 }
  0x53   :  { %307 = vmatpush.bf16.msrb.mxu1 %v918_v17  ;;  %340 = vmatpush.bf16.msrb.mxu3 %v918_v17 }
  0x56   :  { %350 = vmatpush.bf16.msra.mxu0 %v834_v0 }
  0x5a   :  { %351 = vmatpush.bf16.msra.mxu0 %v837_v1 }
  0x5e   :  { %352 = vmatpush.bf16.msra.mxu0 %v847_v4 }
  0x62   :  { %353 = vmatpush.bf16.msra.mxu0 %v855_v6 }
  0x66   :  { %354 = vmatpush.bf16.msra.mxu0 %v863_v8 }
  0x6a   :  { %355 = vmatpush.bf16.msra.mxu0 %v871_v10 }
  0x6e   :  { %356 = vmatpush.bf16.msra.mxu0 %v877_v11 }
  0x72   :  { %357 = vmatpush.bf16.msra.mxu0 %v881_v12 }
  0xb2   :  { %v180_v19 = vpop.f32.mrf.mxu0 }
  0xb3   :  { %v184_v20 = vadd.f32 %v180_v19, %v121_v18 }
  0xb5   :  { %609 = vtanh.f32 %v184_v20 }
  0xba   :  { %v182_v21 = vpop.f32.mrf.mxu0 }
  0xbb   :  { %v610_v22 = vpop.eup %609 }
  0xbc   :  { %v186_v23 = vpack.c.bf16 %v610_v22, %v610_v22 }
  0xbe   :  { %243 = vmatmul.bf16.vlgmr.msra.gmra.mxu1 %v186_v23  ;;  %259 = vmatmul.bf16.vlgmr.msra.gmra.mxu2 %v186_v23 }
  0xbf   :  { %366 = vmatpush.bf16.msra.mxu1 %v840_v2  ;;  %383 = vmatpush.bf16.msra.mxu2 %v834_v0 }
  0xc3   :  { %367 = vmatpush.bf16.msra.mxu1 %v843_v3  ;;  %384 = vmatpush.bf16.msra.mxu2 %v837_v1 }
  0xc7   :  { %368 = vmatpush.bf16.msra.mxu1 %v851_v5  ;;  %385 = vmatpush.bf16.msra.mxu2 %v847_v4 }
  0xcb   :  { %369 = vmatpush.bf16.msra.mxu1 %v859_v7  ;;  %386 = vmatpush.bf16.msra.mxu2 %v855_v6 }
  0xcf   :  { %370 = vmatpush.bf16.msra.mxu1 %v867_v9  ;;  %387 = vmatpush.bf16.msra.mxu2 %v863_v8 }
  0xd3   :  { %371 = vmatpush.bf16.msra.mxu1 %v910_v15  ;;  %388 = vmatpush.bf16.msra.mxu2 %v871_v10 }
  0xd7   :  { %372 = vmatpush.bf16.msra.mxu1 %v914_v16  ;;  %389 = vmatpush.bf16.msra.mxu2 %v877_v11 }
  0xdb   :  { %373 = vmatpush.bf16.msra.mxu1 %v918_v17  ;;  %390 = vmatpush.bf16.msra.mxu2 %v881_v12 }
 0x13b   :  { %v244_v24 = vpop.f32.mrf.mxu1 }
 0x13c   :  { %248 = vst [vmem:[#allocation11] sm:$0xff] %v244_v24 }
 0x141   :  { %v260_v26 = vpop.f32.mrf.mxu2 }
 0x142   :  { %v264_v27 = vadd.f32 %v260_v26, %v250_v25 }
 0x143   :  { %v246_v28 = vpop.f32.mrf.mxu1 }
 0x144   :  { %611 = vtanh.f32 %v264_v27 }
 0x149   :  { %v262_v29 = vpop.f32.mrf.mxu2 }
 0x14a   :  { %v612_v30 = vpop.eup %611 }
 0x14b   :  { %v266_v31 = vpack.c.bf16 %v612_v30, %v612_v30 }
 0x14d   :  { %275 = vmatmul.bf16.vlgmr.msra.gmra.mxu3 %v266_v31  ;;  %292 = vmatmul.bf16.vlgmr.msrb.gmra.mxu0 %v266_v31 }
 0x14e   :  { %399 = vmatpush.bf16.msra.mxu3 %v840_v2  ;;  %416 = vmatpush.bf16.msrb.mxu0 %v834_v0 }
 0x152   :  { %400 = vmatpush.bf16.msra.mxu3 %v843_v3  ;;  %417 = vmatpush.bf16.msrb.mxu0 %v837_v1 }
 0x156   :  { %401 = vmatpush.bf16.msra.mxu3 %v851_v5  ;;  %418 = vmatpush.bf16.msrb.mxu0 %v847_v4 }
 0x15a   :  { %402 = vmatpush.bf16.msra.mxu3 %v859_v7  ;;  %419 = vmatpush.bf16.msrb.mxu0 %v855_v6 }
 0x15e   :  { %403 = vmatpush.bf16.msra.mxu3 %v867_v9  ;;  %420 = vmatpush.bf16.msrb.mxu0 %v863_v8 }
 0x162   :  { %404 = vmatpush.bf16.msra.mxu3 %v910_v15  ;;  %421 = vmatpush.bf16.msrb.mxu0 %v871_v10 }
 0x166   :  { %405 = vmatpush.bf16.msra.mxu3 %v914_v16  ;;  %422 = vmatpush.bf16.msrb.mxu0 %v877_v11 }
 0x16a   :  { %406 = vmatpush.bf16.msra.mxu3 %v918_v17  ;;  %423 = vmatpush.bf16.msrb.mxu0 %v881_v12 }
 0x1ca   :  { %v293_v33 = vpop.f32.mrf.mxu0 }
 0x1cb   :  { %v297_v34 = vadd.f32 %v293_v33, %v283_v32 }
 0x1cd   :  { %613 = vtanh.f32 %v297_v34 }
 0x1d0   :  { %v276_v35 = vpop.f32.mrf.mxu3 }
 0x1d1   :  { %281 = vst [vmem:[#allocation11 + $0x8] sm:$0xff] %v276_v35 }
 0x1d2   :  { %v295_v36 = vpop.f32.mrf.mxu0 }
 0x1d3   :  { %v614_v37 = vpop.eup %613 }
 0x1d4   :  { %v299_v38 = vpack.c.bf16 %v614_v37, %v614_v37 }
 0x1d6   :  { %308 = vmatmul.bf16.vlgmr.msrb.gmra.mxu1 %v299_v38  ;;  %325 = vmatmul.bf16.vlgmr.msrb.gmra.mxu2 %v299_v38 }
 0x1d7   :  { %432 = vmatpush.bf16.msrb.mxu1 %v840_v2  ;;  %449 = vmatpush.bf16.msrb.mxu2 %v834_v0  ;;  %v415_v0 = vld [vmem:[#allocation3 + $0x30] sm:$0xff] }
 0x1d8   :  { %v278_v39 = vpop.f32.mrf.mxu3 }
 0x1db   :  { %433 = vmatpush.bf16.msrb.mxu1 %v843_v3  ;;  %450 = vmatpush.bf16.msrb.mxu2 %v837_v1 }
 0x1df   :  { %434 = vmatpush.bf16.msrb.mxu1 %v851_v5  ;;  %451 = vmatpush.bf16.msrb.mxu2 %v847_v4 }
 0x1e3   :  { %435 = vmatpush.bf16.msrb.mxu1 %v859_v7  ;;  %452 = vmatpush.bf16.msrb.mxu2 %v855_v6 }
 0x1e7   :  { %436 = vmatpush.bf16.msrb.mxu1 %v867_v9  ;;  %453 = vmatpush.bf16.msrb.mxu2 %v863_v8 }
 0x1eb   :  { %437 = vmatpush.bf16.msrb.mxu1 %v910_v15  ;;  %454 = vmatpush.bf16.msrb.mxu2 %v871_v10 }
 0x1ef   :  { %438 = vmatpush.bf16.msrb.mxu1 %v914_v16  ;;  %455 = vmatpush.bf16.msrb.mxu2 %v877_v11 }
 0x1f3   :  { %439 = vmatpush.bf16.msrb.mxu1 %v918_v17  ;;  %456 = vmatpush.bf16.msrb.mxu2 %v881_v12 }
 0x253   :  { %v309_v40 = vpop.f32.mrf.mxu1 }
 0x254   :  { %314 = vst [vmem:[#allocation11 + $0x10] sm:$0xff] %v309_v40 }
 0x259   :  { %v326_v42 = vpop.f32.mrf.mxu2 }
 0x25a   :  { %v330_v43 = vadd.f32 %v326_v42, %v316_v41 }
 0x25b   :  { %v311_v44 = vpop.f32.mrf.mxu1 }
 0x25c   :  { %615 = vtanh.f32 %v330_v43 }
 0x261   :  { %v328_v45 = vpop.f32.mrf.mxu2 }
 0x262   :  { %v616_v46 = vpop.eup %615 }
 0x263   :  { %v332_v47 = vpack.c.bf16 %v616_v46, %v616_v46 }
 0x265   :  { %341 = vmatmul.bf16.vlgmr.msrb.gmra.mxu3 %v332_v47  ;;  %358 = vmatmul.bf16.vlgmr.msra.gmra.mxu0 %v332_v47 }
 0x266   :  { %465 = vmatpush.bf16.msrb.mxu3 %v840_v2 }
 0x26a   :  { %466 = vmatpush.bf16.msrb.mxu3 %v843_v3 }
 0x26e   :  { %467 = vmatpush.bf16.msrb.mxu3 %v851_v5 }
 0x272   :  { %468 = vmatpush.bf16.msrb.mxu3 %v859_v7 }
 0x276   :  { %469 = vmatpush.bf16.msrb.mxu3 %v867_v9  ;;  %v448_v9 = vld [vmem:[#allocation3 + $0x38] sm:$0xff] }
 0x27a   :  { %470 = vmatpush.bf16.msrb.mxu3 %v910_v15 }
 0x27e   :  { %471 = vmatpush.bf16.msrb.mxu3 %v914_v16 }
 0x282   :  { %472 = vmatpush.bf16.msrb.mxu3 %v918_v17 }
 0x2e2   :  { %v359_v49 = vpop.f32.mrf.mxu0 }
 0x2e3   :  { %v363_v50 = vadd.f32 %v359_v49, %v349_v48 }
 0x2e5   :  { %617 = vtanh.f32 %v363_v50 }
 0x2e8   :  { %v342_v51 = vpop.f32.mrf.mxu3 }
 0x2e9   :  { %347 = vst [vmem:[#allocation11 + $0x18] sm:$0xff] %v342_v51 }
 0x2ea   :  { %v361_v52 = vpop.f32.mrf.mxu0 }
 0x2eb   :  { %v618_v53 = vpop.eup %617 }
 0x2ec   :  { %v365_v54 = vpack.c.bf16 %v618_v53, %v618_v53 }
 0x2ee   :  { %374 = vmatmul.bf16.vlgmr.msra.gmra.mxu1 %v365_v54  ;;  %391 = vmatmul.bf16.vlgmr.msra.gmra.mxu2 %v365_v54 }
 0x2f0   :  { %v344_v55 = vpop.f32.mrf.mxu3 }
 0x36b   :  { %v375_v56 = vpop.f32.mrf.mxu1 }
 0x36c   :  { %380 = vst [vmem:[#allocation11 + $0x20] sm:$0xff] %v375_v56 }
 0x371   :  { %v392_v58 = vpop.f32.mrf.mxu2 }
 0x372   :  { %v396_v59 = vadd.f32 %v392_v58, %v382_v57 }
 0x373   :  { %v377_v60 = vpop.f32.mrf.mxu1 }
 0x374   :  { %619 = vtanh.f32 %v396_v59 }
 0x379   :  { %v394_v61 = vpop.f32.mrf.mxu2 }
 0x37a   :  { %v620_v62 = vpop.eup %619 }
 0x37b   :  { %v398_v63 = vpack.c.bf16 %v620_v62, %v620_v62 }
 0x37d   :  { %407 = vmatmul.bf16.vlgmr.msra.gmra.mxu3 %v398_v63  ;;  %424 = vmatmul.bf16.vlgmr.msrb.gmra.mxu0 %v398_v63 }
 0x3fa   :  { %v425_v1 = vpop.f32.mrf.mxu0 }
 0x3fb   :  { %v429_v2 = vadd.f32 %v425_v1, %v415_v0 }
 0x3fd   :  { %621 = vtanh.f32 %v429_v2 }
 0x400   :  { %v408_v3 = vpop.f32.mrf.mxu3 }
 0x401   :  { %413 = vst [vmem:[#allocation11 + $0x28] sm:$0xff] %v408_v3 }
 0x402   :  { %v427_v4 = vpop.f32.mrf.mxu0 }
 0x403   :  { %v622_v5 = vpop.eup %621 }
 0x404   :  { %v431_v6 = vpack.c.bf16 %v622_v5, %v622_v5 }
 0x406   :  { %440 = vmatmul.bf16.vlgmr.msrb.gmra.mxu1 %v431_v6  ;;  %457 = vmatmul.bf16.vlgmr.msrb.gmra.mxu2 %v431_v6 }
 0x408   :  { %v410_v7 = vpop.f32.mrf.mxu3 }
 0x483   :  { %v441_v8 = vpop.f32.mrf.mxu1 }
 0x484   :  { %446 = vst [vmem:[#allocation11 + $0x30] sm:$0xff] %v441_v8 }
 0x489   :  { %v458_v10 = vpop.f32.mrf.mxu2 }
 0x48a   :  { %v462_v11 = vadd.f32 %v458_v10, %v448_v9 }
 0x48b   :  { %v443_v12 = vpop.f32.mrf.mxu1 }
 0x48c   :  { %623 = vtanh.f32 %v462_v11 }
 0x491   :  { %v460_v13 = vpop.f32.mrf.mxu2 }
 0x492   :  { %v624_v14 = vpop.eup %623 }
 0x493   :  { %481 = vst [vmem:[#allocation12] sm:$0xff] %v624_v14  ;;  %v464_v15 = vpack.c.bf16 %v624_v14, %v624_v14 }
 0x494   :  { %505 = dma.vmem_to_hbm [thread:$0]  %s501_s3, 128, %s503_s17, [#allocation13]  }
 0x495   :  { %473 = vmatmul.bf16.vlgmr.msrb.gmra.mxu3 %v464_v15 }
 0x518   :  { %v474_v16 = vpop.f32.mrf.mxu3 }
 0x519   :  { %479 = vst [vmem:[#allocation11 + $0x38] sm:$0xff] %v474_v16 }
 0x51a   :  { %494 = dma.vmem_to_hbm [thread:$0]  %s487_s19, 1024, %s489_s22, [#allocation5], %s781_s28, %s781_s28, %s782_s29  }
 0x520   :  { %v476_v17 = vpop.f32.mrf.mxu3 }
 0x521   :  { %775 = dma.done.wait [#allocation5], 1024  }
 0x522   :  { %776 = vsyncadd [#allocation5], 4294966272 }
 0x523   :  { %777 = dma.done.wait [#allocation13], 128  }
 0x524   :  { %778 = vsyncadd [#allocation13], 4294967168 }
 0x525   :  { %514 = vsyncpa [#allocation4], 1 }
 0x526   :  { %515 = vsyncpa [#allocation7], 1 }
 0x527   :  { %516 = vsyncpa [#allocation10], 1 }
 0x528   :  { %517 = vsyncpa [#allocation5], 1 }
 0x529   :  { %518 = vsyncpa [#allocation13], 1 }

</bundles_post_ra>
